<compile_context>
chip_gen: v7x
topology: tpu7x:2x2x1
jax: 0.10.0
libtpu: 0.0.40
codegen_flags: <defaults>
</compile_context>

<pallas_src>
import functools

import jax
import jax.numpy as jnp
from jax.experimental import pallas as pl
from jax.experimental.pallas import tpu as pltpu


def _round_up(n: int, m: int) -> int:
    return ((n + m - 1) // m) * m


# ----------------------------- fused kernel -----------------------------

def _fused_hvae_kernel(
    x_ref, eps_ref,                                     # [TB,in] f32, [TB,3L] f32
    w1x_ref,                                            # [in, 3H]      bf16 (fused x-side layer-1)
    w1z_ref,                                            # [2, L, H]     bf16 (desire/intention z-side layer-1)
    w2_ref,                                             # [3, H, H]     bf16
    wml_ref,                                            # [3, H, 2L]    bf16 (fused mu|logvar heads)
    wd1_ref,                                            # [3, L, H]     bf16
    wd2_ref,                                            # [3, H, rec_max] bf16 (col-padded decoders)
    bias_ref,                                           # [15, BW]      f32  (all biases)
    out_ref,                                            # [TB, out_lanes] f32
    *, latent_dim: int, hidden_dim: int, rec_max: int, rec_widths: tuple,
):
    L, H = latent_dim, hidden_dim

    x = x_ref[...].astype(jnp.bfloat16)
    eps = eps_ref[...]                                   # f32

    def bias(row, width):                                # [1, width] f32 view
        return bias_ref[row:row + 1, :width]

    def bdot(a_f32, w_bf16):                             # bf16 MXU dot, f32 accumulate
        return jnp.dot(a_f32.astype(jnp.bfloat16), w_bf16,
                       preferred_element_type=jnp.float32)

    # one fused MXU pass for all three x-side first layers: [TB,in] @ [in,3H]
    pre_x_all = jnp.dot(x, w1x_ref[...], preferred_element_type=jnp.float32)

    def vae_tail(k, pre1, eps_k):
        # encoder
        h = jnp.maximum(pre1 + bias(0 + k, H), 0.0)
        h = jnp.maximum(bdot(h, w2_ref[k]) + bias(3 + k, H), 0.0)
        # fused mu|logvar head
        ml = bdot(h, wml_ref[k]) + bias(6 + k, 2 * L)
        mu, logvar = ml[:, :L], ml[:, L:]
        # reparameterize (f32 elementwise)
        z = mu + eps_k * jnp.exp(0.5 * logvar)
        # decoder
        d = jnp.maximum(bdot(z, wd1_ref[k]) + bias(9 + k, H), 0.0)
        rec = bdot(d, wd2_ref[k]) + bias(12 + k, rec_max)
        return z, mu, logvar, rec[:, :rec_widths[k]]

    # belief VAE on x
    z_b, mu_b, lv_b, rec_b = vae_tail(0, pre_x_all[:, :H], eps[:, :L])
    # desire VAE conditioned on z_belief (split-weight dot, no concat)
    pre_d = pre_x_all[:, H:2 * H] + bdot(z_b, w1z_ref[0])
    z_d, mu_d, lv_d, rec_d = vae_tail(1, pre_d, eps[:, L:2 * L])
    # intention VAE conditioned on z_desire
    pre_i = pre_x_all[:, 2 * H:] + bdot(z_d, w1z_ref[1])
    z_i, mu_i, lv_i, rec_i = vae_tail(2, pre_i, eps[:, 2 * L:])

    # single lane-dense full-width store (slab padding lives inside rec_i)
    out_ref[...] = jnp.concatenate(
        [z_b, mu_b, lv_b, rec_b,
         z_d, mu_d, lv_d, rec_d,
         z_i, mu_i, lv_i, rec_i], axis=-1)


# ------------------------------- wrapper -------------------------------

def hierarchical_mind_state_vae_forward(packed, x, eps_belief, eps_desire, eps_intention):
    """Fused forward: one pallas_call for all three VAE blocks."""
    B, in_dim = x.shape
    L = eps_belief.shape[-1]
    H = packed["w2"].shape[-1]
    cond = in_dim + L                                  # recon dim for desire / intention

    raw_lanes = (3 * L + in_dim) + 2 * (3 * L + cond)
    out_lanes = max(128, _round_up(raw_lanes, 128))
    pad_lanes = out_lanes - raw_lanes
    rec_max = packed["wd2"].shape[-1]
    assert rec_max == cond + pad_lanes, "packed params do not match input shapes"

    # one [B, 3L] eps slab -> one DMA instead of three
    eps_all = jnp.concatenate([eps_belief, eps_desire, eps_intention], axis=-1)

    # batch tiling: grid is parallel (megacore on v7x); pad B up to a tile multiple
    TB = min(_round_up(B, 8), 512)
    B_pad = _round_up(B, TB)
    if B_pad != B:
        x_in = jnp.pad(x, ((0, B_pad - B), (0, 0)))
        eps_in = jnp.pad(eps_all, ((0, B_pad - B), (0, 0)))
    else:
        x_in, eps_in = x, eps_all
    grid = (B_pad // TB,)

    args = (x_in, eps_in, packed["w1x"], packed["w1z"], packed["w2"],
            packed["wml"], packed["wd1"], packed["wd2"], packed["bias"])

    def batch_spec(shape):
        return pl.BlockSpec((TB,) + tuple(shape[1:]), lambda i: (i, 0))

    def full_spec(a):
        nd = a.ndim
        return pl.BlockSpec(a.shape, lambda i, nd=nd: (0,) * nd)

    in_specs = [batch_spec(x_in.shape), batch_spec(eps_in.shape)] + \
               [full_spec(a) for a in args[2:]]
    out_specs = pl.BlockSpec((TB, out_lanes), lambda i: (i, 0))

    # advisory cost estimate for XLA's scheduler
    flops = 2 * B_pad * (in_dim * 3 * H + 2 * L * H
                         + 3 * (H * H + H * 2 * L + L * H + H * rec_max))
    bytes_accessed = sum(int(a.size) * a.dtype.itemsize for a in args) + B_pad * out_lanes * 4
    cost = pl.CostEstimate(flops=flops, transcendentals=3 * B_pad * L,
                           bytes_accessed=bytes_accessed)

    kernel = functools.partial(
        _fused_hvae_kernel, latent_dim=L, hidden_dim=H, rec_max=rec_max,
        rec_widths=(in_dim, cond, rec_max))

    slab = pl.pallas_call(
        kernel,
        out_shape=jax.ShapeDtypeStruct((B_pad, out_lanes), jnp.float32),
        grid_spec=pltpu.PrefetchScalarGridSpec(
            num_scalar_prefetch=0, grid=grid,
            in_specs=in_specs, out_specs=out_specs),
        compiler_params=pltpu.CompilerParams(
            dimension_semantics=("parallel",),
            vmem_limit_bytes=32 * 1024 * 1024),      # v7x-safe (64 MiB physical)
        cost_estimate=cost,
    )(*args)

    slab = slab[:B]

    # slice the lane-dense slab apart (static slices, fused by XLA)
    offset = 0

    def take(width):
        nonlocal offset
        v = slab[:, offset:offset + width]
        offset += width
        return v

    z_b, mu_b, lv_b, rec_b = take(L), take(L), take(L), take(in_dim)
    z_d, mu_d, lv_d, rec_d = take(L), take(L), take(L), take(cond)
    z_i, mu_i, lv_i, rec_i = take(L), take(L), take(L), take(cond)

    return {
        "z_belief": z_b, "mu_belief": mu_b, "logvar_belief": lv_b, "recon_belief": rec_b,
        "z_desire": z_d, "mu_desire": mu_d, "logvar_desire": lv_d, "recon_desire": rec_d,
        "z_intention": z_i, "mu_intention": mu_i, "logvar_intention": lv_i, "recon_intention": rec_i,
    }


forward_jit = jax.jit(hierarchical_mind_state_vae_forward)


# ---------------------------- parameter init ----------------------------

def _uniform(key, shape, fan_in):
    bound = 1.0 / (fan_in ** 0.5)
    return jax.random.uniform(key, shape, jnp.float32, -bound, bound)


def init_vae_block_params(key, x_dim, cond_dim, latent_dim, hidden_dim):
    """PyTorch nn.Linear-style init, weights in [in, out] layout.  cond_dim is
    0 for the belief block, latent_dim for desire/intention (concat fan-in)."""
    in_dim = x_dim + cond_dim
    keys = jax.random.split(key, 12)
    return dict(
        w1=_uniform(keys[0], (in_dim, hidden_dim), in_dim),
        b1=_uniform(keys[1], (1, hidden_dim), in_dim),
        w2=_uniform(keys[2], (hidden_dim, hidden_dim), hidden_dim),
        b2=_uniform(keys[3], (1, hidden_dim), hidden_dim),
        w_mu=_uniform(keys[4], (hidden_dim, latent_dim), hidden_dim),
        b_mu=_uniform(keys[5], (1, latent_dim), hidden_dim),
        w_lv=_uniform(keys[6], (hidden_dim, latent_dim), hidden_dim),
        b_lv=_uniform(keys[7], (1, latent_dim), hidden_dim),
        w_d1=_uniform(keys[8], (latent_dim, hidden_dim), latent_dim),
        b_d1=_uniform(keys[9], (1, hidden_dim), latent_dim),
        w_d2=_uniform(keys[10], (hidden_dim, in_dim), hidden_dim),
        b_d2=_uniform(keys[11], (1, in_dim), hidden_dim),
    )


def init_hierarchical_params(key, input_dim, latent_dim, hidden_dim):
    kb, kd, ki = jax.random.split(key, 3)
    return {
        "belief": init_vae_block_params(kb, input_dim, 0, latent_dim, hidden_dim),
        "desire": init_vae_block_params(kd, input_dim, latent_dim, latent_dim, hidden_dim),
        "intention": init_vae_block_params(ki, input_dim, latent_dim, latent_dim, hidden_dim),
    }


def pack_params(params, input_dim, latent_dim, hidden_dim):
    """Pack per-block params into the kernel's 7 stacked arrays (weights bf16,
    biases one f32 slab).  Done once, outside the hot path."""
    L, H = latent_dim, hidden_dim
    cond = input_dim + L
    raw_lanes = (3 * L + input_dim) + 2 * (3 * L + cond)
    out_lanes = max(128, _round_up(raw_lanes, 128))
    rec_max = cond + (out_lanes - raw_lanes)          # intention recon absorbs slab pad
    bw = _round_up(max(H, 2 * L, rec_max), 128)

    pb, pd, pi = params["belief"], params["desire"], params["intention"]
    blocks = (pb, pd, pi)

    w1x = jnp.concatenate([pb["w1"], pd["w1"][:input_dim], pi["w1"][:input_dim]], axis=1)
    w1z = jnp.stack([pd["w1"][input_dim:], pi["w1"][input_dim:]])
    w2 = jnp.stack([p["w2"] for p in blocks])
    wml = jnp.stack([jnp.concatenate([p["w_mu"], p["w_lv"]], axis=1) for p in blocks])
    wd1 = jnp.stack([p["w_d1"] for p in blocks])

    def pad_cols(w, width):
        return jnp.pad(w, ((0, 0), (0, width - w.shape[1])))

    wd2 = jnp.stack([pad_cols(p["w_d2"], rec_max) for p in blocks])

    def brow(b):
        v = b.reshape(-1)
        return jnp.pad(v, (0, bw - v.shape[0]))

    bias_rows = (
        [brow(p["b1"]) for p in blocks]
        + [brow(p["b2"]) for p in blocks]
        + [brow(jnp.concatenate([p["b_mu"], p["b_lv"]], axis=-1)) for p in blocks]
        + [brow(p["b_d1"]) for p in blocks]
        + [brow(p["b_d2"]) for p in blocks]
    )
    bias = jnp.stack(bias_rows).astype(jnp.float32)   # [15, bw]

    bf = jnp.bfloat16
    return dict(w1x=w1x.astype(bf), w1z=w1z.astype(bf), w2=w2.astype(bf),
                wml=wml.astype(bf), wd1=wd1.astype(bf), wd2=wd2.astype(bf),
                bias=bias)


# ------------------------------- test -------------------------------

if __name__ == "__main__":
    # Small shapes consistent with the module defaults (latent=32, hidden=128).
    # TODO(synk): the module samples eps internally via torch.randn_like; here
    # eps is an explicit input so the kernel stays deterministic.
    B = 8
    INPUT_DIM = 32
    LATENT_DIM = 32
    HIDDEN_DIM = 128

    root = jax.random.PRNGKey(0)
    k_params, k_x, k_eb, k_ed, k_ei = jax.random.split(root, 5)

    params = init_hierarchical_params(k_params, INPUT_DIM, LATENT_DIM, HIDDEN_DIM)
    packed = pack_params(params, INPUT_DIM, LATENT_DIM, HIDDEN_DIM)

    x = jax.random.normal(k_x, (B, INPUT_DIM), jnp.float32)
    eps_belief = jax.random.normal(k_eb, (B, LATENT_DIM), jnp.float32)
    eps_desire = jax.random.normal(k_ed, (B, LATENT_DIM), jnp.float32)
    eps_intention = jax.random.normal(k_ei, (B, LATENT_DIM), jnp.float32)

    outs = forward_jit(packed, x, eps_belief, eps_desire, eps_intention)
    outs = jax.block_until_ready(outs)

    # Pure-JAX reference in the module's (concat) formulation with the same
    # bf16-at-the-dot precision the kernel uses.
    def _bdot(a, w):
        return jnp.dot(a.astype(jnp.bfloat16), w.astype(jnp.bfloat16),
                       preferred_element_type=jnp.float32)

    def _ref_block(p, xin, eps):
        h = jnp.maximum(_bdot(xin, p["w1"]) + p["b1"], 0.0)
        h = jnp.maximum(_bdot(h, p["w2"]) + p["b2"], 0.0)
        mu = _bdot(h, p["w_mu"]) + p["b_mu"]
        lv = _bdot(h, p["w_lv"]) + p["b_lv"]
        z = mu + eps * jnp.exp(0.5 * lv)
        d = jnp.maximum(_bdot(z, p["w_d1"]) + p["b_d1"], 0.0)
        rec = _bdot(d, p["w_d2"]) + p["b_d2"]
        return z, mu, lv, rec

    z_b, mu_b, lv_b, rec_b = _ref_block(params["belief"], x, eps_belief)
    z_d, mu_d, lv_d, rec_d = _ref_block(
        params["desire"], jnp.concatenate([x, z_b], axis=-1), eps_desire)
    z_i, mu_i, lv_i, rec_i = _ref_block(
        params["intention"], jnp.concatenate([x, z_d], axis=-1), eps_intention)

    refs = {
        "z_belief": z_b, "mu_belief": mu_b, "logvar_belief": lv_b, "recon_belief": rec_b,
        "z_desire": z_d, "mu_desire": mu_d, "logvar_desire": lv_d, "recon_desire": rec_d,
        "z_intention": z_i, "mu_intention": mu_i, "logvar_intention": lv_i, "recon_intention": rec_i,
    }
    for name, ref_val in refs.items():
        assert outs[name].shape == ref_val.shape, name
        assert jnp.allclose(outs[name], ref_val, atol=1e-2, rtol=1e-2), name

    print("KERNEL_OK")
</pallas_src>

<mosaic_0001>
module attributes {stable_mosaic.version = 11 : i64} {
  func.func @_fused_hvae_kernel(%arg0: i32, %arg1: memref<8x32xf32, #tpu.memory_space<vmem>>, %arg2: memref<8x96xf32, #tpu.memory_space<vmem>>, %arg3: memref<32x384xbf16, #tpu.memory_space<vmem>>, %arg4: memref<2x32x128xbf16, #tpu.memory_space<vmem>>, %arg5: memref<3x128x128xbf16, #tpu.memory_space<vmem>>, %arg6: memref<3x128x64xbf16, #tpu.memory_space<vmem>>, %arg7: memref<3x32x128xbf16, #tpu.memory_space<vmem>>, %arg8: memref<3x128x128xbf16, #tpu.memory_space<vmem>>, %arg9: memref<15x128xf32, #tpu.memory_space<vmem>>, %arg10: memref<8x512xf32, #tpu.memory_space<vmem>>) attributes {dimension_semantics = [#tpu.dimension_semantics<parallel>], iteration_bounds = array<i64: 1>, scalar_prefetch = 0 : i64, scratch_operands = 0 : i64, tpu.core_type = #tpu.core_type<tc>, window_params = [{transform_indices = @transform_0, window_bounds = array<i64: 8, 32>}, {transform_indices = @transform_1, window_bounds = array<i64: 8, 96>}, {pipeline_mode = #tpu.pipeline_mode<synchronous>, transform_indices = @transform_2, window_bounds = array<i64: 32, 384>}, {pipeline_mode = #tpu.pipeline_mode<synchronous>, transform_indices = @transform_3, window_bounds = array<i64: 2, 32, 128>}, {pipeline_mode = #tpu.pipeline_mode<synchronous>, transform_indices = @transform_4, window_bounds = array<i64: 3, 128, 128>}, {pipeline_mode = #tpu.pipeline_mode<synchronous>, transform_indices = @transform_5, window_bounds = array<i64: 3, 128, 64>}, {pipeline_mode = #tpu.pipeline_mode<synchronous>, transform_indices = @transform_6, window_bounds = array<i64: 3, 32, 128>}, {pipeline_mode = #tpu.pipeline_mode<synchronous>, transform_indices = @transform_7, window_bounds = array<i64: 3, 128, 128>}, {pipeline_mode = #tpu.pipeline_mode<synchronous>, transform_indices = @transform_8, window_bounds = array<i64: 15, 128>}, {transform_indices = @transform_9, window_bounds = array<i64: 8, 512>}]} {
    %c0 = arith.constant 0 : index
    %c0_0 = arith.constant 0 : index
    %0 = vector.load %arg1[%c0, %c0_0] : memref<8x32xf32, #tpu.memory_space<vmem>>, vector<8x32xf32>
    %1 = arith.truncf %0 : vector<8x32xf32> to vector<8x32xbf16>
    %c0_1 = arith.constant 0 : index
    %c0_2 = arith.constant 0 : index
    %2 = vector.load %arg2[%c0_1, %c0_2] : memref<8x96xf32, #tpu.memory_space<vmem>>, vector<8x96xf32>
    %c0_3 = arith.constant 0 : index
    %c0_4 = arith.constant 0 : index
    %3 = vector.load %arg3[%c0_3, %c0_4] : memref<32x384xbf16, #tpu.memory_space<vmem>>, vector<32x384xbf16>
    %cst = arith.constant dense<0.000000e+00> : vector<8x384xf32>
    %4 = tpu.matmul %1, %3, %cst {dimension_numbers = #tpu.dot_dimension_numbers<[1], [0], [0], [1], [0, 0, 1, 1], [], []>} : vector<8x32xbf16>, vector<32x384xbf16>, vector<8x384xf32> -> vector<8x384xf32>
    %5 = vector.extract_strided_slice %4 {offsets = [0, 0], sizes = [8, 128], strides = [1, 1]} : vector<8x384xf32> to vector<8x128xf32>
    %6 = vector.extract_strided_slice %2 {offsets = [0, 0], sizes = [8, 32], strides = [1, 1]} : vector<8x96xf32> to vector<8x32xf32>
    %c0_5 = arith.constant 0 : index
    %c0_6 = arith.constant 0 : index
    %7 = vector.load %arg9[%c0_5, %c0_6] : memref<15x128xf32, #tpu.memory_space<vmem>>, vector<1x128xf32>
    %8 = vector.broadcast %7 : vector<1x128xf32> to vector<8x128xf32>
    %9 = arith.addf %5, %8 : vector<8x128xf32>
    %cst_7 = arith.constant 0.000000e+00 : f32
    %10 = vector.broadcast %cst_7 : f32 to vector<8x128xf32>
    %11 = arith.maximumf %9, %10 : vector<8x128xf32>
    %c0_8 = arith.constant 0 : index
    %c0_9 = arith.constant 0 : index
    %c0_10 = arith.constant 0 : index
    %12 = vector.load %arg5[%c0_8, %c0_9, %c0_10] : memref<3x128x128xbf16, #tpu.memory_space<vmem>>, vector<1x128x128xbf16>
    %13 = vector.shape_cast %12 : vector<1x128x128xbf16> to vector<128x128xbf16>
    %14 = arith.truncf %11 : vector<8x128xf32> to vector<8x128xbf16>
    %cst_11 = arith.constant dense<0.000000e+00> : vector<8x128xf32>
    %15 = tpu.matmul %14, %13, %cst_11 {dimension_numbers = #tpu.dot_dimension_numbers<[1], [0], [0], [1], [0, 0, 1, 1], [], []>} : vector<8x128xbf16>, vector<128x128xbf16>, vector<8x128xf32> -> vector<8x128xf32>
    %c3 = arith.constant 3 : index
    %c0_12 = arith.constant 0 : index
    %16 = vector.load %arg9[%c3, %c0_12] : memref<15x128xf32, #tpu.memory_space<vmem>>, vector<1x128xf32>
    %17 = vector.broadcast %16 : vector<1x128xf32> to vector<8x128xf32>
    %18 = arith.addf %15, %17 : vector<8x128xf32>
    %cst_13 = arith.constant 0.000000e+00 : f32
    %19 = vector.broadcast %cst_13 : f32 to vector<8x128xf32>
    %20 = arith.maximumf %18, %19 : vector<8x128xf32>
    %c0_14 = arith.constant 0 : index
    %c0_15 = arith.constant 0 : index
    %c0_16 = arith.constant 0 : index
    %21 = vector.load %arg6[%c0_14, %c0_15, %c0_16] : memref<3x128x64xbf16, #tpu.memory_space<vmem>>, vector<1x128x64xbf16>
    %22 = vector.shape_cast %21 : vector<1x128x64xbf16> to vector<128x64xbf16>
    %23 = arith.truncf %20 : vector<8x128xf32> to vector<8x128xbf16>
    %cst_17 = arith.constant dense<0.000000e+00> : vector<8x64xf32>
    %24 = tpu.matmul %23, %22, %cst_17 {dimension_numbers = #tpu.dot_dimension_numbers<[1], [0], [0], [1], [0, 0, 1, 1], [], []>} : vector<8x128xbf16>, vector<128x64xbf16>, vector<8x64xf32> -> vector<8x64xf32>
    %c6 = arith.constant 6 : index
    %c0_18 = arith.constant 0 : index
    %25 = vector.load %arg9[%c6, %c0_18] : memref<15x128xf32, #tpu.memory_space<vmem>>, vector<1x64xf32>
    %26 = vector.broadcast %25 : vector<1x64xf32> to vector<8x64xf32>
    %27 = arith.addf %24, %26 : vector<8x64xf32>
    %28 = vector.extract_strided_slice %27 {offsets = [0, 0], sizes = [8, 32], strides = [1, 1]} : vector<8x64xf32> to vector<8x32xf32>
    %29 = vector.extract_strided_slice %27 {offsets = [0, 32], sizes = [8, 32], strides = [1, 1]} : vector<8x64xf32> to vector<8x32xf32>
    %cst_19 = arith.constant 5.000000e-01 : f32
    %30 = vector.broadcast %cst_19 : f32 to vector<8x32xf32>
    %31 = arith.mulf %30, %29 : vector<8x32xf32>
    %32 = math.exp %31 : vector<8x32xf32>
    %33 = arith.mulf %6, %32 : vector<8x32xf32>
    %34 = arith.addf %28, %33 : vector<8x32xf32>
    %c0_20 = arith.constant 0 : index
    %c0_21 = arith.constant 0 : index
    %c0_22 = arith.constant 0 : index
    %35 = vector.load %arg7[%c0_20, %c0_21, %c0_22] : memref<3x32x128xbf16, #tpu.memory_space<vmem>>, vector<1x32x128xbf16>
    %36 = vector.shape_cast %35 : vector<1x32x128xbf16> to vector<32x128xbf16>
    %37 = arith.truncf %34 : vector<8x32xf32> to vector<8x32xbf16>
    %cst_23 = arith.constant dense<0.000000e+00> : vector<8x128xf32>
    %38 = tpu.matmul %37, %36, %cst_23 {dimension_numbers = #tpu.dot_dimension_numbers<[1], [0], [0], [1], [0, 0, 1, 1], [], []>} : vector<8x32xbf16>, vector<32x128xbf16>, vector<8x128xf32> -> vector<8x128xf32>
    %c9 = arith.constant 9 : index
    %c0_24 = arith.constant 0 : index
    %39 = vector.load %arg9[%c9, %c0_24] : memref<15x128xf32, #tpu.memory_space<vmem>>, vector<1x128xf32>
    %40 = vector.broadcast %39 : vector<1x128xf32> to vector<8x128xf32>
    %41 = arith.addf %38, %40 : vector<8x128xf32>
    %cst_25 = arith.constant 0.000000e+00 : f32
    %42 = vector.broadcast %cst_25 : f32 to vector<8x128xf32>
    %43 = arith.maximumf %41, %42 : vector<8x128xf32>
    %c0_26 = arith.constant 0 : index
    %c0_27 = arith.constant 0 : index
    %c0_28 = arith.constant 0 : index
    %44 = vector.load %arg8[%c0_26, %c0_27, %c0_28] : memref<3x128x128xbf16, #tpu.memory_space<vmem>>, vector<1x128x128xbf16>
    %45 = vector.shape_cast %44 : vector<1x128x128xbf16> to vector<128x128xbf16>
    %46 = arith.truncf %43 : vector<8x128xf32> to vector<8x128xbf16>
    %cst_29 = arith.constant dense<0.000000e+00> : vector<8x128xf32>
    %47 = tpu.matmul %46, %45, %cst_29 {dimension_numbers = #tpu.dot_dimension_numbers<[1], [0], [0], [1], [0, 0, 1, 1], [], []>} : vector<8x128xbf16>, vector<128x128xbf16>, vector<8x128xf32> -> vector<8x128xf32>
    %c12 = arith.constant 12 : index
    %c0_30 = arith.constant 0 : index
    %48 = vector.load %arg9[%c12, %c0_30] : memref<15x128xf32, #tpu.memory_space<vmem>>, vector<1x128xf32>
    %49 = vector.broadcast %48 : vector<1x128xf32> to vector<8x128xf32>
    %50 = arith.addf %47, %49 : vector<8x128xf32>
    %51 = vector.extract_strided_slice %50 {offsets = [0, 0], sizes = [8, 32], strides = [1, 1]} : vector<8x128xf32> to vector<8x32xf32>
    %52 = vector.extract_strided_slice %4 {offsets = [0, 128], sizes = [8, 128], strides = [1, 1]} : vector<8x384xf32> to vector<8x128xf32>
    %c0_31 = arith.constant 0 : index
    %c0_32 = arith.constant 0 : index
    %c0_33 = arith.constant 0 : index
    %53 = vector.load %arg4[%c0_31, %c0_32, %c0_33] : memref<2x32x128xbf16, #tpu.memory_space<vmem>>, vector<1x32x128xbf16>
    %54 = vector.shape_cast %53 : vector<1x32x128xbf16> to vector<32x128xbf16>
    %55 = arith.truncf %34 : vector<8x32xf32> to vector<8x32xbf16>
    %cst_34 = arith.constant dense<0.000000e+00> : vector<8x128xf32>
    %56 = tpu.matmul %55, %54, %cst_34 {dimension_numbers = #tpu.dot_dimension_numbers<[1], [0], [0], [1], [0, 0, 1, 1], [], []>} : vector<8x32xbf16>, vector<32x128xbf16>, vector<8x128xf32> -> vector<8x128xf32>
    %57 = arith.addf %52, %56 : vector<8x128xf32>
    %58 = vector.extract_strided_slice %2 {offsets = [0, 32], sizes = [8, 32], strides = [1, 1]} : vector<8x96xf32> to vector<8x32xf32>
    %c1 = arith.constant 1 : index
    %c0_35 = arith.constant 0 : index
    %59 = vector.load %arg9[%c1, %c0_35] : memref<15x128xf32, #tpu.memory_space<vmem>>, vector<1x128xf32>
    %60 = vector.broadcast %59 : vector<1x128xf32> to vector<8x128xf32>
    %61 = arith.addf %57, %60 : vector<8x128xf32>
    %cst_36 = arith.constant 0.000000e+00 : f32
    %62 = vector.broadcast %cst_36 : f32 to vector<8x128xf32>
    %63 = arith.maximumf %61, %62 : vector<8x128xf32>
    %c1_37 = arith.constant 1 : index
    %c0_38 = arith.constant 0 : index
    %c0_39 = arith.constant 0 : index
    %64 = vector.load %arg5[%c1_37, %c0_38, %c0_39] : memref<3x128x128xbf16, #tpu.memory_space<vmem>>, vector<1x128x128xbf16>
    %65 = vector.shape_cast %64 : vector<1x128x128xbf16> to vector<128x128xbf16>
    %66 = arith.truncf %63 : vector<8x128xf32> to vector<8x128xbf16>
    %cst_40 = arith.constant dense<0.000000e+00> : vector<8x128xf32>
    %67 = tpu.matmul %66, %65, %cst_40 {dimension_numbers = #tpu.dot_dimension_numbers<[1], [0], [0], [1], [0, 0, 1, 1], [], []>} : vector<8x128xbf16>, vector<128x128xbf16>, vector<8x128xf32> -> vector<8x128xf32>
    %c4 = arith.constant 4 : index
    %c0_41 = arith.constant 0 : index
    %68 = vector.load %arg9[%c4, %c0_41] : memref<15x128xf32, #tpu.memory_space<vmem>>, vector<1x128xf32>
    %69 = vector.broadcast %68 : vector<1x128xf32> to vector<8x128xf32>
    %70 = arith.addf %67, %69 : vector<8x128xf32>
    %cst_42 = arith.constant 0.000000e+00 : f32
    %71 = vector.broadcast %cst_42 : f32 to vector<8x128xf32>
    %72 = arith.maximumf %70, %71 : vector<8x128xf32>
    %c1_43 = arith.constant 1 : index
    %c0_44 = arith.constant 0 : index
    %c0_45 = arith.constant 0 : index
    %73 = vector.load %arg6[%c1_43, %c0_44, %c0_45] : memref<3x128x64xbf16, #tpu.memory_space<vmem>>, vector<1x128x64xbf16>
    %74 = vector.shape_cast %73 : vector<1x128x64xbf16> to vector<128x64xbf16>
    %75 = arith.truncf %72 : vector<8x128xf32> to vector<8x128xbf16>
    %cst_46 = arith.constant dense<0.000000e+00> : vector<8x64xf32>
    %76 = tpu.matmul %75, %74, %cst_46 {dimension_numbers = #tpu.dot_dimension_numbers<[1], [0], [0], [1], [0, 0, 1, 1], [], []>} : vector<8x128xbf16>, vector<128x64xbf16>, vector<8x64xf32> -> vector<8x64xf32>
    %c7 = arith.constant 7 : index
    %c0_47 = arith.constant 0 : index
    %77 = vector.load %arg9[%c7, %c0_47] : memref<15x128xf32, #tpu.memory_space<vmem>>, vector<1x64xf32>
    %78 = vector.broadcast %77 : vector<1x64xf32> to vector<8x64xf32>
    %79 = arith.addf %76, %78 : vector<8x64xf32>
    %80 = vector.extract_strided_slice %79 {offsets = [0, 0], sizes = [8, 32], strides = [1, 1]} : vector<8x64xf32> to vector<8x32xf32>
    %81 = vector.extract_strided_slice %79 {offsets = [0, 32], sizes = [8, 32], strides = [1, 1]} : vector<8x64xf32> to vector<8x32xf32>
    %cst_48 = arith.constant 5.000000e-01 : f32
    %82 = vector.broadcast %cst_48 : f32 to vector<8x32xf32>
    %83 = arith.mulf %82, %81 : vector<8x32xf32>
    %84 = math.exp %83 : vector<8x32xf32>
    %85 = arith.mulf %58, %84 : vector<8x32xf32>
    %86 = arith.addf %80, %85 : vector<8x32xf32>
    %c1_49 = arith.constant 1 : index
    %c0_50 = arith.constant 0 : index
    %c0_51 = arith.constant 0 : index
    %87 = vector.load %arg7[%c1_49, %c0_50, %c0_51] : memref<3x32x128xbf16, #tpu.memory_space<vmem>>, vector<1x32x128xbf16>
    %88 = vector.shape_cast %87 : vector<1x32x128xbf16> to vector<32x128xbf16>
    %89 = arith.truncf %86 : vector<8x32xf32> to vector<8x32xbf16>
    %cst_52 = arith.constant dense<0.000000e+00> : vector<8x128xf32>
    %90 = tpu.matmul %89, %88, %cst_52 {dimension_numbers = #tpu.dot_dimension_numbers<[1], [0], [0], [1], [0, 0, 1, 1], [], []>} : vector<8x32xbf16>, vector<32x128xbf16>, vector<8x128xf32> -> vector<8x128xf32>
    %c10 = arith.constant 10 : index
    %c0_53 = arith.constant 0 : index
    %91 = vector.load %arg9[%c10, %c0_53] : memref<15x128xf32, #tpu.memory_space<vmem>>, vector<1x128xf32>
    %92 = vector.broadcast %91 : vector<1x128xf32> to vector<8x128xf32>
    %93 = arith.addf %90, %92 : vector<8x128xf32>
    %cst_54 = arith.constant 0.000000e+00 : f32
    %94 = vector.broadcast %cst_54 : f32 to vector<8x128xf32>
    %95 = arith.maximumf %93, %94 : vector<8x128xf32>
    %c1_55 = arith.constant 1 : index
    %c0_56 = arith.constant 0 : index
    %c0_57 = arith.constant 0 : index
    %96 = vector.load %arg8[%c1_55, %c0_56, %c0_57] : memref<3x128x128xbf16, #tpu.memory_space<vmem>>, vector<1x128x128xbf16>
    %97 = vector.shape_cast %96 : vector<1x128x128xbf16> to vector<128x128xbf16>
    %98 = arith.truncf %95 : vector<8x128xf32> to vector<8x128xbf16>
    %cst_58 = arith.constant dense<0.000000e+00> : vector<8x128xf32>
    %99 = tpu.matmul %98, %97, %cst_58 {dimension_numbers = #tpu.dot_dimension_numbers<[1], [0], [0], [1], [0, 0, 1, 1], [], []>} : vector<8x128xbf16>, vector<128x128xbf16>, vector<8x128xf32> -> vector<8x128xf32>
    %c13 = arith.constant 13 : index
    %c0_59 = arith.constant 0 : index
    %100 = vector.load %arg9[%c13, %c0_59] : memref<15x128xf32, #tpu.memory_space<vmem>>, vector<1x128xf32>
    %101 = vector.broadcast %100 : vector<1x128xf32> to vector<8x128xf32>
    %102 = arith.addf %99, %101 : vector<8x128xf32>
    %103 = vector.extract_strided_slice %102 {offsets = [0, 0], sizes = [8, 64], strides = [1, 1]} : vector<8x128xf32> to vector<8x64xf32>
    %104 = vector.extract_strided_slice %4 {offsets = [0, 256], sizes = [8, 128], strides = [1, 1]} : vector<8x384xf32> to vector<8x128xf32>
    %c1_60 = arith.constant 1 : index
    %c0_61 = arith.constant 0 : index
    %c0_62 = arith.constant 0 : index
    %105 = vector.load %arg4[%c1_60, %c0_61, %c0_62] : memref<2x32x128xbf16, #tpu.memory_space<vmem>>, vector<1x32x128xbf16>
    %106 = vector.shape_cast %105 : vector<1x32x128xbf16> to vector<32x128xbf16>
    %107 = arith.truncf %86 : vector<8x32xf32> to vector<8x32xbf16>
    %cst_63 = arith.constant dense<0.000000e+00> : vector<8x128xf32>
    %108 = tpu.matmul %107, %106, %cst_63 {dimension_numbers = #tpu.dot_dimension_numbers<[1], [0], [0], [1], [0, 0, 1, 1], [], []>} : vector<8x32xbf16>, vector<32x128xbf16>, vector<8x128xf32> -> vector<8x128xf32>
    %109 = arith.addf %104, %108 : vector<8x128xf32>
    %110 = vector.extract_strided_slice %2 {offsets = [0, 64], sizes = [8, 32], strides = [1, 1]} : vector<8x96xf32> to vector<8x32xf32>
    %c2 = arith.constant 2 : index
    %c0_64 = arith.constant 0 : index
    %111 = vector.load %arg9[%c2, %c0_64] : memref<15x128xf32, #tpu.memory_space<vmem>>, vector<1x128xf32>
    %112 = vector.broadcast %111 : vector<1x128xf32> to vector<8x128xf32>
    %113 = arith.addf %109, %112 : vector<8x128xf32>
    %cst_65 = arith.constant 0.000000e+00 : f32
    %114 = vector.broadcast %cst_65 : f32 to vector<8x128xf32>
    %115 = arith.maximumf %113, %114 : vector<8x128xf32>
    %c2_66 = arith.constant 2 : index
    %c0_67 = arith.constant 0 : index
    %c0_68 = arith.constant 0 : index
    %116 = vector.load %arg5[%c2_66, %c0_67, %c0_68] : memref<3x128x128xbf16, #tpu.memory_space<vmem>>, vector<1x128x128xbf16>
    %117 = vector.shape_cast %116 : vector<1x128x128xbf16> to vector<128x128xbf16>
    %118 = arith.truncf %115 : vector<8x128xf32> to vector<8x128xbf16>
    %cst_69 = arith.constant dense<0.000000e+00> : vector<8x128xf32>
    %119 = tpu.matmul %118, %117, %cst_69 {dimension_numbers = #tpu.dot_dimension_numbers<[1], [0], [0], [1], [0, 0, 1, 1], [], []>} : vector<8x128xbf16>, vector<128x128xbf16>, vector<8x128xf32> -> vector<8x128xf32>
    %c5 = arith.constant 5 : index
    %c0_70 = arith.constant 0 : index
    %120 = vector.load %arg9[%c5, %c0_70] : memref<15x128xf32, #tpu.memory_space<vmem>>, vector<1x128xf32>
    %121 = vector.broadcast %120 : vector<1x128xf32> to vector<8x128xf32>
    %122 = arith.addf %119, %121 : vector<8x128xf32>
    %cst_71 = arith.constant 0.000000e+00 : f32
    %123 = vector.broadcast %cst_71 : f32 to vector<8x128xf32>
    %124 = arith.maximumf %122, %123 : vector<8x128xf32>
    %c2_72 = arith.constant 2 : index
    %c0_73 = arith.constant 0 : index
    %c0_74 = arith.constant 0 : index
    %125 = vector.load %arg6[%c2_72, %c0_73, %c0_74] : memref<3x128x64xbf16, #tpu.memory_space<vmem>>, vector<1x128x64xbf16>
    %126 = vector.shape_cast %125 : vector<1x128x64xbf16> to vector<128x64xbf16>
    %127 = arith.truncf %124 : vector<8x128xf32> to vector<8x128xbf16>
    %cst_75 = arith.constant dense<0.000000e+00> : vector<8x64xf32>
    %128 = tpu.matmul %127, %126, %cst_75 {dimension_numbers = #tpu.dot_dimension_numbers<[1], [0], [0], [1], [0, 0, 1, 1], [], []>} : vector<8x128xbf16>, vector<128x64xbf16>, vector<8x64xf32> -> vector<8x64xf32>
    %c8 = arith.constant 8 : index
    %c0_76 = arith.constant 0 : index
    %129 = vector.load %arg9[%c8, %c0_76] : memref<15x128xf32, #tpu.memory_space<vmem>>, vector<1x64xf32>
    %130 = vector.broadcast %129 : vector<1x64xf32> to vector<8x64xf32>
    %131 = arith.addf %128, %130 : vector<8x64xf32>
    %132 = vector.extract_strided_slice %131 {offsets = [0, 0], sizes = [8, 32], strides = [1, 1]} : vector<8x64xf32> to vector<8x32xf32>
    %133 = vector.extract_strided_slice %131 {offsets = [0, 32], sizes = [8, 32], strides = [1, 1]} : vector<8x64xf32> to vector<8x32xf32>
    %cst_77 = arith.constant 5.000000e-01 : f32
    %134 = vector.broadcast %cst_77 : f32 to vector<8x32xf32>
    %135 = arith.mulf %134, %133 : vector<8x32xf32>
    %136 = math.exp %135 : vector<8x32xf32>
    %137 = arith.mulf %110, %136 : vector<8x32xf32>
    %138 = arith.addf %132, %137 : vector<8x32xf32>
    %c2_78 = arith.constant 2 : index
    %c0_79 = arith.constant 0 : index
    %c0_80 = arith.constant 0 : index
    %139 = vector.load %arg7[%c2_78, %c0_79, %c0_80] : memref<3x32x128xbf16, #tpu.memory_space<vmem>>, vector<1x32x128xbf16>
    %140 = vector.shape_cast %139 : vector<1x32x128xbf16> to vector<32x128xbf16>
    %141 = arith.truncf %138 : vector<8x32xf32> to vector<8x32xbf16>
    %cst_81 = arith.constant dense<0.000000e+00> : vector<8x128xf32>
    %142 = tpu.matmul %141, %140, %cst_81 {dimension_numbers = #tpu.dot_dimension_numbers<[1], [0], [0], [1], [0, 0, 1, 1], [], []>} : vector<8x32xbf16>, vector<32x128xbf16>, vector<8x128xf32> -> vector<8x128xf32>
    %c11 = arith.constant 11 : index
    %c0_82 = arith.constant 0 : index
    %143 = vector.load %arg9[%c11, %c0_82] : memref<15x128xf32, #tpu.memory_space<vmem>>, vector<1x128xf32>
    %144 = vector.broadcast %143 : vector<1x128xf32> to vector<8x128xf32>
    %145 = arith.addf %142, %144 : vector<8x128xf32>
    %cst_83 = arith.constant 0.000000e+00 : f32
    %146 = vector.broadcast %cst_83 : f32 to vector<8x128xf32>
    %147 = arith.maximumf %145, %146 : vector<8x128xf32>
    %c2_84 = arith.constant 2 : index
    %c0_85 = arith.constant 0 : index
    %c0_86 = arith.constant 0 : index
    %148 = vector.load %arg8[%c2_84, %c0_85, %c0_86] : memref<3x128x128xbf16, #tpu.memory_space<vmem>>, vector<1x128x128xbf16>
    %149 = vector.shape_cast %148 : vector<1x128x128xbf16> to vector<128x128xbf16>
    %150 = arith.truncf %147 : vector<8x128xf32> to vector<8x128xbf16>
    %cst_87 = arith.constant dense<0.000000e+00> : vector<8x128xf32>
    %151 = tpu.matmul %150, %149, %cst_87 {dimension_numbers = #tpu.dot_dimension_numbers<[1], [0], [0], [1], [0, 0, 1, 1], [], []>} : vector<8x128xbf16>, vector<128x128xbf16>, vector<8x128xf32> -> vector<8x128xf32>
    %c14 = arith.constant 14 : index
    %c0_88 = arith.constant 0 : index
    %152 = vector.load %arg9[%c14, %c0_88] : memref<15x128xf32, #tpu.memory_space<vmem>>, vector<1x128xf32>
    %153 = vector.broadcast %152 : vector<1x128xf32> to vector<8x128xf32>
    %154 = arith.addf %151, %153 : vector<8x128xf32>
    %155 = tpu.concatenate %34, %28, %29, %51, %86, %80, %81, %103, %138, %132, %133, %154 in 1 : vector<8x32xf32>, vector<8x32xf32>, vector<8x32xf32>, vector<8x32xf32>, vector<8x32xf32>, vector<8x32xf32>, vector<8x32xf32>, vector<8x64xf32>, vector<8x32xf32>, vector<8x32xf32>, vector<8x32xf32>, vector<8x128xf32> -> vector<8x512xf32>
    %c0_89 = arith.constant 0 : index
    %c0_90 = arith.constant 0 : index
    %156 = vector.load %arg10[%c0_89, %c0_90] : memref<8x512xf32, #tpu.memory_space<vmem>>, vector<8x512xf32>
    tpu.vector_store %arg10[%c0_89, %c0_90], %155 {strides = array<i32>} : memref<8x512xf32, #tpu.memory_space<vmem>>, vector<8x512xf32>,
    return
  }
  func.func @transform_0(%arg0: i32) -> (i32, i32) {
    %c0_i32 = arith.constant 0 : i32
    %c0_i32_0 = arith.constant 0 : i32
    return %arg0, %c0_i32 : i32, i32
  }
  func.func @transform_1(%arg0: i32) -> (i32, i32) {
    %c0_i32 = arith.constant 0 : i32
    %c0_i32_0 = arith.constant 0 : i32
    return %arg0, %c0_i32 : i32, i32
  }
  func.func @transform_2(%arg0: i32) -> (i32, i32) {
    %c0_i32 = arith.constant 0 : i32
    %c0_i32_0 = arith.constant 0 : i32
    %c0_i32_1 = arith.constant 0 : i32
    return %c0_i32, %c0_i32_0 : i32, i32
  }
  func.func @transform_3(%arg0: i32) -> (i32, i32, i32) {
    %c0_i32 = arith.constant 0 : i32
    %c0_i32_0 = arith.constant 0 : i32
    %c0_i32_1 = arith.constant 0 : i32
    %c0_i32_2 = arith.constant 0 : i32
    return %c0_i32, %c0_i32_0, %c0_i32_1 : i32, i32, i32
  }
  func.func @transform_4(%arg0: i32) -> (i32, i32, i32) {
    %c0_i32 = arith.constant 0 : i32
    %c0_i32_0 = arith.constant 0 : i32
    %c0_i32_1 = arith.constant 0 : i32
    %c0_i32_2 = arith.constant 0 : i32
    return %c0_i32, %c0_i32_0, %c0_i32_1 : i32, i32, i32
  }
  func.func @transform_5(%arg0: i32) -> (i32, i32, i32) {
    %c0_i32 = arith.constant 0 : i32
    %c0_i32_0 = arith.constant 0 : i32
    %c0_i32_1 = arith.constant 0 : i32
    %c0_i32_2 = arith.constant 0 : i32
    return %c0_i32, %c0_i32_0, %c0_i32_1 : i32, i32, i32
  }
  func.func @transform_6(%arg0: i32) -> (i32, i32, i32) {
    %c0_i32 = arith.constant 0 : i32
    %c0_i32_0 = arith.constant 0 : i32
    %c0_i32_1 = arith.constant 0 : i32
    %c0_i32_2 = arith.constant 0 : i32
    return %c0_i32, %c0_i32_0, %c0_i32_1 : i32, i32, i32
  }
  func.func @transform_7(%arg0: i32) -> (i32, i32, i32) {
    %c0_i32 = arith.constant 0 : i32
    %c0_i32_0 = arith.constant 0 : i32
    %c0_i32_1 = arith.constant 0 : i32
    %c0_i32_2 = arith.constant 0 : i32
    return %c0_i32, %c0_i32_0, %c0_i32_1 : i32, i32, i32
  }
  func.func @transform_8(%arg0: i32) -> (i32, i32) {
    %c0_i32 = arith.constant 0 : i32
    %c0_i32_0 = arith.constant 0 : i32
    %c0_i32_1 = arith.constant 0 : i32
    return %c0_i32, %c0_i32_0 : i32, i32
  }
  func.func @transform_9(%arg0: i32) -> (i32, i32) {
    %c0_i32 = arith.constant 0 : i32
    %c0_i32_0 = arith.constant 0 : i32
    return %arg0, %c0_i32 : i32, i32
  }
}

</mosaic_0001>

<bundles_post_ra>
// kernel: hierarchical_mind_state_vae_forward.1
= control target key start
LH: loop header
LB: loop body
LE: loop exit
PB: predicated region body
PF: predicated region fallthrough
CT: control target
= control target key end

     0   :  { %14 = vsyncpa [#allocation3], 0  ;;  %s2739_s0 = inlined_call_operand.vmem [shape: f32[8,32], index: 0, kind: input, shape index: {}]   ;;  %s2740_s1 = inlined_call_operand.vmem [shape: f32[8,96], index: 1, kind: input, shape index: {}]   ;;  %s2741_s2 = inlined_call_operand.vmem [shape: bf16[32,384], index: 2, kind: input, shape index: {}]   ;;  %s2742_s3 = inlined_call_operand.vmem [shape: bf16[2,32,128], index: 3, kind: input, shape index: {}]   ;;  %s2743_s4 = inlined_call_operand.vmem [shape: bf16[3,128,128], index: 4, kind: input, shape index: {}]   ;;  %s2744_s5 = inlined_call_operand.vmem [shape: bf16[3,128,64], index: 5, kind: input, shape index: {}]   ;;  %s2745_s6 = inlined_call_operand.vmem [shape: bf16[3,32,128], index: 6, kind: input, shape index: {}]   ;;  %s2746_s7 = inlined_call_operand.hbm [shape: bf16[3,128,128], index: 7, kind: input, shape index: {}]   ;;  %s2747_s8 = inlined_call_operand.hbm [shape: f32[15,128], index: 8, kind: input, shape index: {}]   ;;  %s2748_s9 = inlined_call_operand.vmem [shape: f32[8,512], index: 9, kind: output, shape index: {}]  }
   0x1   :  { %15 = vsyncpa [#allocation5], 0  ;;  %s2268_s30 = smov [#allocation2]   ;;  %s2220_s13 = scalar_lea.hbm %s2746_s7, 3072 }
   0x2   :  { %s35_s10 = sshll.u32 %s2268_s30, 4  ;;  %p2221_p0 = scmp.ne.s32.totalorder %s2746_s7, %s2220_s13  ;;  %s36_s10 = int_to_ptr.vmem [resolvable:$true] %s35_s10 }
   0x3   :  { %p2224_p1 = scmp.lt.u32.totalorder %s2220_s13, %s2746_s7 }
   0x5   :  { %p2226_p2 = pnand %p2224_p1, %p2221_p0 }
   0x7   :  { %2229 = shalt.err (!%p2226_p2)
}
   0x8   :  { %s2230_s18 = scalar_lea.vmem %s36_s10, 3072  ;;  %p2235_p4 = scmp.lt.s32.totalorder %s36_s10, %s36_s10 }
   0x9   :  { %p2231_p3 = scmp.ne.s32.totalorder %s36_s10, %s2230_s18  ;;  %p2236_p5 = scmp.lt.s32.totalorder %s2230_s18, %s2230_s18 }
   0xb   :  { %p2237_p6 = por %p2236_p5, %p2235_p4 }
   0xd   :  { %p2238_p7 = pnand %p2237_p6, %p2231_p3 }
   0xf   :  { %2241 = shalt.err (!%p2238_p7)
}
  0x10   :  { %s2269_s19 = smov 64   ;;  %s2270_s20 = smov 4  }
  0x11   :  { %41 = dma.hbm_to_vmem [thread:$0]  %s2746_s7, 3072, %s36_s10, [#allocation3], %s2269_s19, %s2269_s19, %s2270_s20  }
  0x12   :  { %s2271_s23 = smov [#allocation4]   ;;  %s2242_s27 = scalar_lea.hbm %s2747_s8, 256 }
  0x13   :  { %s47_s24 = sshll.u32 %s2271_s23, 4  ;;  %p2243_p8 = scmp.ne.s32.totalorder %s2747_s8, %s2242_s27  ;;  %s48_s24 = int_to_ptr.vmem [resolvable:$true] %s47_s24 }
  0x14   :  { %p2246_p9 = scmp.lt.u32.totalorder %s2242_s27, %s2747_s8 }
  0x16   :  { %p2248_p10 = pnand %p2246_p9, %p2243_p8 }
  0x18   :  { %2251 = shalt.err (!%p2248_p10)
}
  0x19   :  { %s2252_s12 = scalar_lea.vmem %s48_s24, 256  ;;  %p2257_p12 = scmp.lt.s32.totalorder %s48_s24, %s48_s24 }
  0x1a   :  { %p2253_p11 = scmp.ne.s32.totalorder %s48_s24, %s2252_s12  ;;  %p2258_p13 = scmp.lt.s32.totalorder %s2252_s12, %s2252_s12 }
  0x1c   :  { %p2259_p0 = por %p2258_p13, %p2257_p12 }
  0x1e   :  { %p2260_p1 = pnand %p2259_p0, %p2253_p11 }
  0x20   :  { %2263 = shalt.err (!%p2260_p1)
}
  0x21   :  { %s2272_s7 = smov 128   ;;  %s2273_s10 = smov 8  }
  0x22   :  { %53 = dma.hbm_to_vmem [thread:$0]  %s2747_s8, 256, %s48_s24, [#allocation5], %s2272_s7, %s2272_s7, %s2273_s10  }
  0x23   :  { %2264 = dma.done.wait [#allocation3], 3072  }
  0x24   :  { %2265 = vsyncadd [#allocation3], 4294964224 }
  0x25   :  { %2266 = dma.done.wait [#allocation5], 256  }
  0x26   :  { %2267 = vsyncadd [#allocation5], 4294967040  ;;  %v2274_v0 = vmov 0   ;;  %v2275_v1 = vmov 0.0   ;;  %vm2276_vm0 = vmmov 0   ;;  %v61_v6 = vld [vmem:[%s2739_s0] sm:$0xff] }
  0x27   :  { %140 = vmatprep.mubr.bf16.mxu0 %v2274_v0  ;;  %1913 = vmatprep.subr.bf16.mxu1 %v2275_v1  ;;  %v2124_v2 = vld [vmem:[%s2741_s2 + $0x4] ss:$12 sps:$4 sm:$0xff]   ;;  %v2126_v3 = vld [vmem:[%s2741_s2] ss:$12 sps:$4 sm:$0xff]   ;;  %v2127_v4 = vld [vmem:[%s2741_s2 + $0x1c] ss:$12 sps:$4 sm:$0xff]   ;;  %v62_v7 = vpack.c.bf16 %v61_v6, %v61_v6 }
  0x28   :  { %1929 = vmatprep.mubr.msk.bf16.mxu1 %vm2276_vm0, %v2275_v1  ;;  %108 = vmatprep.subr.bf16.mxu0 %v2124_v2  ;;  %v2129_v5 = vld [vmem:[%s2741_s2 + $0x18] ss:$12 sps:$4 sm:$0xff]   ;;  %vm104_vm1 = vcmask 261120   ;;  %v2130_v8 = vld [vmem:[%s2741_s2 + $0x8] ss:$12 sps:$4 sm:$0xff]   ;;  %s2277_s17 = smov 96  }
  0x29   :  { %109 = vmatpush1.bf16.msra.mxu0 %v2126_v3  ;;  %v2131_v9 = vld [vmem:[%s2741_s2 + $0x20] ss:$12 sps:$4 sm:$0xff]   ;;  %v2134_v12 = vld [vmem:[%s2743_s4 + $0x10] sm:$0xff]   ;;  %v2135_v13 = vld [vmem:[%s2743_s4 + $0x18] sm:$0xff]   ;;  %s2278_s15 = smov 32   ;;  %vm1582_vm2 = vcmask 785408  }
  0x2a   :  { %110 = vmatprep.subr.bf16.mxu0 %v2127_v4  ;;  %v2132_v10 = vld [vmem:[%s2743_s4] sm:$0xff]   ;;  %v2133_v11 = vld [vmem:[%s2743_s4 + $0x8] sm:$0xff]   ;;  %v2138_v16 = vld [vmem:[%s2743_s4 + $0x30] sm:$0xff]   ;;  %vm1580_vm3 = vcmask 523264  }
  0x2b   :  { %v2136_v14 = vld [vmem:[%s2743_s4 + $0x20] sm:$0xff]   ;;  %v2137_v15 = vld [vmem:[%s2743_s4 + $0x28] sm:$0xff]   ;;  %v2139_v17 = vld [vmem:[%s2743_s4 + $0x38] sm:$0xff]  }
  0x2c   :  { %v2140_v18 = vld [vmem:[%s2744_s5] sm:$0xff]   ;;  %v2141_v19 = vld [vmem:[%s2744_s5 + $0x8] sm:$0xff]   ;;  %v2142_v20 = vld [vmem:[%s2744_s5 + $0x10] sm:$0xff]  }
  0x2d   :  { %111 = vmatpush1.bf16.msra.mxu0 %v2129_v5  ;;  %1914 = vmatpush3.bf16.msra.mxu1 %v2140_v18  ;;  %v2143_v21 = vld [vmem:[%s2744_s5 + $0x18] sm:$0xff]   ;;  %v2144_v22 = vld [vmem:[%s2744_s5 + $0x20] sm:$0xff]   ;;  %v2145_v23 = vld [vmem:[%s2744_s5 + $0x28] sm:$0xff]  }
  0x2e   :  { %1885 = vmatprep.subr.bf16.mxu0 %v2275_v1  ;;  %1915 = vmatprep.subr.bf16.mxu1 %v2275_v1  ;;  %v1608_v24 = vld [vmem:[#allocation4] ss:$0 sm:$0xff]  ;;  %v2146_v36 = vld [vmem:[%s2744_s5 + $0x30] sm:$0xff]   ;;  %v2147_v37 = vld [vmem:[%s2744_s5 + $0x38] sm:$0xff]  }
  0x2f   :  { %v1609_v38 = vld [vmem:[#allocation4 + $0x3] ss:$0 sm:$0xff]  ;;  %v1618_v47 = vld [vmem:[#allocation4 + $0x6] ss:$0 sm:$0xff]  ;;  %v2149_v55 = vld [vmem:[%s2745_s6 + $0x8] sm:$0xff]  }
  0x30   :  { %1606 = vmatmul.mubr.msk.bf16.vlgmr.msra.gmra.mrb[0].mxu0 %vm104_vm1, %v62_v7  ;;  %v2148_v46 = vld [vmem:[%s2745_s6] sm:$0xff]   ;;  %v2153_v58 = vld [vmem:[#allocation2 + $0x8] sm:$0xff]   ;;  %v2154_v59 = vld [vmem:[#allocation2 + $0x10] sm:$0xff]  }
  0x31   :  { %1886 = vmatpush3.bf16.msra.mxu0 %v2130_v8  ;;  %1889 = vmatprep.mubr.msk.bf16.mxu0 %vm2276_vm0, %v2275_v1  ;;  %v2152_v57 = vld [vmem:[#allocation2] sm:$0xff]   ;;  %v2156_v60 = vld [vmem:[#allocation2 + $0x18] sm:$0xff]   ;;  %v2160_v62 = vld [vmem:[#allocation2 + $0x28] sm:$0xff]  }
  0x32   :  { %1887 = vmatprep.subr.bf16.mxu0 %v2275_v1  ;;  %1916 = vmatpush3.bf16.msra.mxu1 %v2141_v19  ;;  %v2158_v61 = vld [vmem:[#allocation2 + $0x20] sm:$0xff]   ;;  %v2151_v6 = vld [vmem:[%s2742_s3 + $0x8] sm:$0xff]  }
  0x33   :  { %1917 = vmatprep.subr.bf16.mxu1 %v2275_v1  ;;  %v2481_v63 = vld [vmem:[%s2740_s1] sm:$0xff]  ;;  %v2157_v8 = vld [vmem:[%s2743_s4 + $0x48] sm:$0xff]  }
  0x34   :  { %v2150_v4 = vld [vmem:[%s2742_s3] sm:$0xff]  }
  0x35   :  { %1888 = vmatpush3.bf16.msra.mxu0 %v2131_v9  ;;  %v2159_v9 = vld [vmem:[%s2743_s4 + $0x50] sm:$0xff]  }
  0x36   :  { %1893 = vmatprep.subr.bf16.mxu0 %v2275_v1  ;;  %1918 = vmatpush3.bf16.msra.mxu1 %v2142_v20 }
  0x37   :  { %1919 = vmatprep.subr.bf16.mxu1 %v2275_v1 }
  0x38   :  { %1890 = vmatmul.mubr.msk.bf16.vlgmr.msra.gmra.mrb[4].mxu0 %vm104_vm1, %v62_v7  ;;  %v2155_v7 = vld [vmem:[%s2743_s4 + $0x40] sm:$0xff]  }
  0x39   :  { %1894 = vmatpush3.bf16.msra.mxu0 %v2132_v10  ;;  %1909 = vmatprep.mubr.msk.bf16.mxu0 %vm2276_vm0, %v2275_v1  ;;  %v2161_v10 = vld [vmem:[%s2743_s4 + $0x58] sm:$0xff]  }
  0x3a   :  { %1895 = vmatprep.subr.bf16.mxu0 %v2275_v1  ;;  %1920 = vmatpush3.bf16.msra.mxu1 %v2143_v21 }
  0x3b   :  { %1921 = vmatprep.subr.bf16.mxu1 %v2275_v1 }
  0x3d   :  { %1896 = vmatpush3.bf16.msra.mxu0 %v2133_v11  ;;  %v2162_v11 = vld [vmem:[#allocation2 + $0x30] sm:$0xff]  }
  0x3e   :  { %1897 = vmatprep.subr.bf16.mxu0 %v2275_v1  ;;  %1922 = vmatpush3.bf16.msra.mxu1 %v2144_v22 }
  0x3f   :  { %1923 = vmatprep.subr.bf16.mxu1 %v2275_v1 }
  0x41   :  { %1898 = vmatpush3.bf16.msra.mxu0 %v2134_v12  ;;  %v2163_v12 = vld [vmem:[%s2743_s4 + $0x60] sm:$0xff]  }
  0x42   :  { %1899 = vmatprep.subr.bf16.mxu0 %v2275_v1  ;;  %1924 = vmatpush3.bf16.msra.mxu1 %v2145_v23 }
  0x43   :  { %1925 = vmatprep.subr.bf16.mxu1 %v2275_v1 }
  0x45   :  { %1900 = vmatpush3.bf16.msra.mxu0 %v2135_v13  ;;  %v2164_v13 = vld [vmem:[#allocation2 + $0x38] sm:$0xff]  }
  0x46   :  { %1901 = vmatprep.subr.bf16.mxu0 %v2275_v1  ;;  %1926 = vmatpush3.bf16.msra.mxu1 %v2146_v36  ;;  %v2170_v36 = vld [vmem:[%s2744_s5 + $0x50] sm:$0xff]  }
  0x47   :  { %1927 = vmatprep.subr.bf16.mxu1 %v2275_v1 }
  0x49   :  { %1902 = vmatpush3.bf16.msra.mxu0 %v2136_v14  ;;  %v2165_v14 = vld [vmem:[%s2743_s4 + $0x68] sm:$0xff]  }
  0x4a   :  { %1903 = vmatprep.subr.bf16.mxu0 %v2275_v1  ;;  %1928 = vmatpush3.bf16.msra.mxu1 %v2147_v37 }
  0x4b   :  { %1941 = vmatprep.subr.bf16.mxu1 %v2275_v1 }
  0x4d   :  { %1904 = vmatpush3.bf16.msra.mxu0 %v2137_v15  ;;  %v2166_v15 = vld [vmem:[%s2743_s4 + $0x70] sm:$0xff]  }
  0x4e   :  { %1905 = vmatprep.subr.bf16.mxu0 %v2275_v1 }
  0x51   :  { %1906 = vmatpush3.bf16.msra.mxu0 %v2138_v16  ;;  %v2167_v16 = vld [vmem:[%s2743_s4 + $0x78] sm:$0xff]  }
  0x52   :  { %1907 = vmatprep.subr.bf16.mxu0 %v2275_v1 }
  0x55   :  { %1908 = vmatpush3.bf16.msra.mxu0 %v2139_v17  ;;  %v1627_v17 = vld [vmem:[#allocation4 + $0x9] ss:$0 sm:$0xff] }
  0x56   :  { %1933 = vmatprep.subr.bf16.mxu0 %v2275_v1 }
 0x103   :  { %v142_v25 = vpop.f32.mrb[0].mxu0 }
 0x104   :  { %v194_v26 = vadd.f32 %v1608_v24, %v142_v25  ;;  %v2444_v27 = vpop.f32.mrb[1].mxu0  ;;  %v2168_v24 = vld [vmem:[%s2744_s5 + $0x40] sm:$0xff]  }
 0x105   :  { %v146_v28 = vpop.f32.mrb[2].mxu0 }
 0x106   :  { %v195_v29 = vmax.f32 %v194_v26, 0.0  ;;  %v147_v30 = vpop.f32.mrb[3].mxu0  ;;  %v1643_v28 = vld [vmem:[#allocation4 + $0x1] ss:$0 sm:$0xff] }
 0x108   :  { %v212_v31 = vpack.c.bf16 %v195_v29, %v195_v29  ;;  %v2169_v29 = vld [vmem:[%s2744_s5 + $0x48] sm:$0xff]  }
 0x10a   :  { %1910 = vmatmul.mubr.bf16.vlgmr.msra.gmra.mrb[8].mxu0 %v212_v31 }
 0x10b   :  { %v2446_v32 = vpop.f32.mrb[4].mxu0  ;;  %1937 = vmatprep.mubr.msk.bf16.mxu0 %vm2276_vm0, %v2275_v1  ;;  %1934 = vmatpush3.bf16.msra.mxu0 %v2148_v46 }
 0x10c   :  { %v1891_v33 = vpop.f32.mrb[5].mxu0  ;;  %1935 = vmatprep.subr.bf16.mxu0 %v2275_v1 }
 0x10d   :  { %v186_v34 = vpop.f32.mrb[6].mxu0 }
 0x10e   :  { %v1892_v35 = vpop.f32.mrb[7].mxu0 }
 0x10f   :  { %1936 = vmatpush3.bf16.msra.mxu0 %v2149_v55 }
 0x110   :  { %1961 = vmatprep.subr.bf16.mxu0 %v2275_v1 }
 0x1dd   :  { %v300_v39 = vpop.f32.mrb[8].mxu0 }
 0x1de   :  { %v301_v40 = vadd.f32 %v1609_v38, %v300_v39  ;;  %v1911_v41 = vpop.f32.mrb[9].mxu0  ;;  %v2172_v39 = vld [vmem:[%s2744_s5 + $0x60] sm:$0xff]  }
 0x1df   :  { %v303_v42 = vpop.f32.mrb[10].mxu0  ;;  %v2174_v41 = vld [vmem:[%s2744_s5 + $0x70] sm:$0xff]  }
 0x1e0   :  { %v306_v43 = vmax.f32 %v301_v40, 0.0  ;;  %v1912_v44 = vpop.f32.mrb[11].mxu0  ;;  %v2173_v40 = vld [vmem:[%s2744_s5 + $0x68] sm:$0xff]   ;;  %v2175_v42 = vld [vmem:[%s2744_s5 + $0x78] sm:$0xff]  }
 0x1e2   :  { %v323_v45 = vpack.c.bf16 %v306_v43, %v306_v43 }
 0x1e4   :  { %1930 = vmatmul.mubr.bf16.vlgmr.msra.gmra.mrb[0].mxu1 %v323_v45 }
 0x1e5   :  { %1957 = vmatprep.mubr.msk.bf16.mxu1 %vm2276_vm0, %v2275_v1  ;;  %1942 = vmatpush3.bf16.msra.mxu1 %v2152_v57  ;;  %v2177_v57 = vld [vmem:[%s2745_s6 + $0x10] sm:$0xff]  }
 0x1e6   :  { %1943 = vmatprep.subr.bf16.mxu1 %v2275_v1 }
 0x1e9   :  { %1944 = vmatpush3.bf16.msra.mxu1 %v2153_v58  ;;  %v1685_v58 = vld [vmem:[#allocation4 + $0x7] ss:$0 sm:$0xff] }
 0x1ea   :  { %1945 = vmatprep.subr.bf16.mxu1 %v2275_v1 }
 0x1ed   :  { %1946 = vmatpush3.bf16.msra.mxu1 %v2154_v59 }
 0x1ee   :  { %1947 = vmatprep.subr.bf16.mxu1 %v2275_v1 }
 0x1f1   :  { %1948 = vmatpush3.bf16.msra.mxu1 %v2156_v60 }
 0x1f2   :  { %1949 = vmatprep.subr.bf16.mxu1 %v2275_v1 }
 0x1f5   :  { %1950 = vmatpush3.bf16.msra.mxu1 %v2158_v61 }
 0x1f6   :  { %1951 = vmatprep.subr.bf16.mxu1 %v2275_v1 }
 0x1f9   :  { %1952 = vmatpush3.bf16.msra.mxu1 %v2160_v62 }
 0x1fa   :  { %1953 = vmatprep.subr.bf16.mxu1 %v2275_v1 }
 0x1fd   :  { %1954 = vmatpush3.bf16.msra.mxu1 %v2162_v11  ;;  %v2180_v11 = vld [vmem:[#allocation2 + $0x40] sm:$0xff]  }
 0x1fe   :  { %1955 = vmatprep.subr.bf16.mxu1 %v2275_v1 }
 0x201   :  { %1956 = vmatpush3.bf16.msra.mxu1 %v2164_v13 }
 0x202   :  { %1989 = vmatprep.subr.bf16.mxu1 %v2275_v1 }
 0x2b7   :  { %v411_v48 = vpop.f32.mrb[0].mxu1 }
 0x2b8   :  { %v2464_v49 = vadd.f32 %v1618_v47, %v411_v48  ;;  %v1931_v50 = vpop.f32.mrb[1].mxu1  ;;  %v1660_v47 = vld [vmem:[#allocation4 + $0x4] ss:$0 sm:$0xff] }
 0x2b9   :  { %v414_v51 = vpop.f32.mrb[2].mxu1 }
 0x2ba   :  { %v417_v52 = vmul.f32 0.5, %v2464_v49  ;;  %v1932_v53 = vpop.f32.mrb[3].mxu1 }
 0x2bc   :  { %v418_v54 = vmul.f32 1.442695, %v417_v52 }
 0x2be   :  { %2214 = vpow2.f32 %v418_v54 }
 0x2c8   :  { %v2215_v56 = vpop.eup %2214 }
 0x2c9   :  { %421 = vrot.lane.b32.xlu0 %v2215_v56, %s2277_s17  ;;  %v2176_v56 = vld [vmem:[%s2742_s3 + $0x10] sm:$0xff]  }
 0x33b   :  { %v422_v0 = vpop.permute.xlu0 %421 }
 0x33c   :  { %v424_v2 = vmul.f32 %v422_v0, %v2481_v63 }
 0x33e   :  { %v2485_v3 = vadd.f32 %v424_v2, %v2464_v49 }
 0x340   :  { %v430_v5 = vpack.c.bf16 %v2485_v3, %v2485_v3 }
 0x342   :  { %1938 = vmatmul.mubr.msk.bf16.vlgmr.msra.gmra.mrb[12].mxu0 %vm104_vm1, %v430_v5 }
 0x343   :  { %1962 = vmatpush3.bf16.msra.mxu0 %v2150_v4  ;;  %1965 = vmatprep.mubr.msk.bf16.mxu0 %vm2276_vm0, %v2275_v1 }
 0x344   :  { %1963 = vmatprep.subr.bf16.mxu0 %v2275_v1 }
 0x347   :  { %1964 = vmatpush3.bf16.msra.mxu0 %v2151_v6  ;;  %v2179_v6 = vld [vmem:[%s2745_s6 + $0x18] sm:$0xff]  }
 0x348   :  { %1969 = vmatprep.subr.bf16.mxu0 %v2275_v1 }
 0x34a   :  { %1966 = vmatmul.mubr.msk.bf16.vlgmr.msra.gmra.mrb[16].mxu0 %vm104_vm1, %v430_v5  ;;  %v2178_v5 = vld [vmem:[%s2742_s3 + $0x18] sm:$0xff]  }
 0x34b   :  { %1970 = vmatpush3.bf16.msra.mxu0 %v2155_v7  ;;  %1985 = vmatprep.mubr.msk.bf16.mxu0 %vm2276_vm0, %v2275_v1 }
 0x34c   :  { %1971 = vmatprep.subr.bf16.mxu0 %v2275_v1 }
 0x34f   :  { %1972 = vmatpush3.bf16.msra.mxu0 %v2157_v8 }
 0x350   :  { %1973 = vmatprep.subr.bf16.mxu0 %v2275_v1 }
 0x353   :  { %1974 = vmatpush3.bf16.msra.mxu0 %v2159_v9 }
 0x354   :  { %1975 = vmatprep.subr.bf16.mxu0 %v2275_v1 }
 0x357   :  { %1976 = vmatpush3.bf16.msra.mxu0 %v2161_v10 }
 0x358   :  { %1977 = vmatprep.subr.bf16.mxu0 %v2275_v1 }
 0x35b   :  { %1978 = vmatpush3.bf16.msra.mxu0 %v2163_v12  ;;  %v2181_v12 = vld [vmem:[%s2743_s4 + $0x80] sm:$0xff]  }
 0x35c   :  { %1979 = vmatprep.subr.bf16.mxu0 %v2275_v1 }
 0x35f   :  { %1980 = vmatpush3.bf16.msra.mxu0 %v2165_v14  ;;  %v2182_v14 = vld [vmem:[#allocation2 + $0x48] sm:$0xff]  }
 0x360   :  { %1981 = vmatprep.subr.bf16.mxu0 %v2275_v1 }
 0x363   :  { %1982 = vmatpush3.bf16.msra.mxu0 %v2166_v15  ;;  %v2184_v15 = vld [vmem:[#allocation2 + $0x50] sm:$0xff]  }
 0x364   :  { %1983 = vmatprep.subr.bf16.mxu0 %v2275_v1 }
 0x367   :  { %1984 = vmatpush3.bf16.msra.mxu0 %v2167_v16  ;;  %v2185_v16 = vld [vmem:[%s2743_s4 + $0x90] sm:$0xff]  }
 0x368   :  { %2009 = vmatprep.subr.bf16.mxu0 %v2275_v1 }
 0x415   :  { %v485_v18 = vpop.f32.mrb[12].mxu0 }
 0x416   :  { %v486_v19 = vadd.f32 %v1627_v17, %v485_v18  ;;  %v1939_v20 = vpop.f32.mrb[13].mxu0  ;;  %v2186_v17 = vld [vmem:[#allocation2 + $0x58] sm:$0xff]  }
 0x417   :  { %v488_v21 = vpop.f32.mrb[14].mxu0  ;;  %v2187_v18 = vld [vmem:[%s2743_s4 + $0x98] sm:$0xff]   ;;  %v2189_v20 = vld [vmem:[%s2743_s4 + $0xa0] sm:$0xff]  }
 0x418   :  { %v491_v22 = vmax.f32 %v486_v19, 0.0  ;;  %v1940_v23 = vpop.f32.mrb[15].mxu0  ;;  %v2188_v19 = vld [vmem:[#allocation2 + $0x60] sm:$0xff]   ;;  %v2190_v21 = vld [vmem:[#allocation2 + $0x68] sm:$0xff]  }
 0x419   :  { %v2192_v23 = vld [vmem:[#allocation2 + $0x70] sm:$0xff]  }
 0x41a   :  { %v508_v25 = vpack.c.bf16 %v491_v22, %v491_v22  ;;  %v2191_v22 = vld [vmem:[%s2743_s4 + $0xa8] sm:$0xff]  }
 0x41c   :  { %1958 = vmatmul.mubr.bf16.vlgmr.msra.gmra.mrb[4].mxu1 %v508_v25  ;;  %v2194_v25 = vld [vmem:[#allocation2 + $0x78] sm:$0xff]  }
 0x41d   :  { %v652_v26 = vpop.f32.mrb[16].mxu0  ;;  %1990 = vmatpush3.bf16.msra.mxu1 %v2168_v24  ;;  %2005 = vmatprep.mubr.msk.bf16.mxu1 %vm2276_vm0, %v2275_v1  ;;  %v2193_v24 = vld [vmem:[%s2743_s4 + $0xb0] sm:$0xff]  }
 0x41e   :  { %v658_v30 = vadd.f32 %v652_v26, %v2444_v27  ;;  %v1967_v31 = vpop.f32.mrb[17].mxu0  ;;  %1991 = vmatprep.subr.bf16.mxu1 %v2275_v1  ;;  %v2171_v27 = vld [vmem:[%s2744_s5 + $0x58] sm:$0xff]  }
 0x41f   :  { %v655_v33 = vpop.f32.mrb[18].mxu0  ;;  %v2195_v26 = vld [vmem:[%s2743_s4 + $0xb8] sm:$0xff]   ;;  %v1718_v31 = vld [vmem:[#allocation4 + $0x2] ss:$0 sm:$0xff] }
 0x420   :  { %v664_v34 = vadd.f32 %v1643_v28, %v658_v30  ;;  %v1968_v35 = vpop.f32.mrb[19].mxu0  ;;  %v1698_v28 = vld [vmem:[#allocation4 + $0xa] ss:$0 sm:$0xff] }
 0x421   :  { %1992 = vmatpush3.bf16.msra.mxu1 %v2169_v29 }
 0x422   :  { %v665_v37 = vmax.f32 %v664_v34, 0.0  ;;  %1993 = vmatprep.subr.bf16.mxu1 %v2275_v1 }
 0x424   :  { %v683_v38 = vpack.c.bf16 %v665_v37, %v665_v37 }
 0x425   :  { %1994 = vmatpush3.bf16.msra.mxu1 %v2170_v36 }
 0x426   :  { %1986 = vmatmul.mubr.bf16.vlgmr.msra.gmra.mrb[20].mxu0 %v683_v38  ;;  %1995 = vmatprep.subr.bf16.mxu1 %v2275_v1 }
 0x427   :  { %2013 = vmatprep.mubr.msk.bf16.mxu0 %vm2276_vm0, %v2275_v1  ;;  %2010 = vmatpush3.bf16.msra.mxu0 %v2177_v57 }
 0x428   :  { %2011 = vmatprep.subr.bf16.mxu0 %v2275_v1 }
 0x429   :  { %1996 = vmatpush3.bf16.msra.mxu1 %v2171_v27 }
 0x42a   :  { %1997 = vmatprep.subr.bf16.mxu1 %v2275_v1 }
 0x42b   :  { %2012 = vmatpush3.bf16.msra.mxu0 %v2179_v6 }
 0x42c   :  { %2017 = vmatprep.subr.bf16.mxu0 %v2275_v1 }
 0x42d   :  { %1998 = vmatpush3.bf16.msra.mxu1 %v2172_v39 }
 0x42e   :  { %1999 = vmatprep.subr.bf16.mxu1 %v2275_v1 }
 0x431   :  { %2000 = vmatpush3.bf16.msra.mxu1 %v2173_v40 }
 0x432   :  { %2001 = vmatprep.subr.bf16.mxu1 %v2275_v1 }
 0x435   :  { %2002 = vmatpush3.bf16.msra.mxu1 %v2174_v41 }
 0x436   :  { %2003 = vmatprep.subr.bf16.mxu1 %v2275_v1 }
 0x439   :  { %2004 = vmatpush3.bf16.msra.mxu1 %v2175_v42  ;;  %v2196_v42 = vld [vmem:[%s2744_s5 + $0x80] sm:$0xff]  }
 0x43a   :  { %2037 = vmatprep.subr.bf16.mxu1 %v2275_v1 }
 0x4ef   :  { %v2574_v43 = vpop.f32.mrb[4].mxu1 }
 0x4f0   :  { %v1959_v44 = vpop.f32.mrb[5].mxu1 }
 0x4f1   :  { %v599_v45 = vpop.f32.mrb[6].mxu1 }
 0x4f2   :  { %v1960_v46 = vpop.f32.mrb[7].mxu1 }
 0x4f9   :  { %v771_v48 = vpop.f32.mrb[20].mxu0 }
 0x4fa   :  { %v772_v50 = vadd.f32 %v1660_v47, %v771_v48  ;;  %v1987_v51 = vpop.f32.mrb[21].mxu0  ;;  %v2198_v47 = vld [vmem:[%s2744_s5 + $0x90] sm:$0xff]   ;;  %v2199_v48 = vld [vmem:[%s2744_s5 + $0x98] sm:$0xff]  }
 0x4fb   :  { %v774_v52 = vpop.f32.mrb[22].mxu0  ;;  %v2201_v51 = vld [vmem:[%s2744_s5 + $0xa8] sm:$0xff]  }
 0x4fc   :  { %v777_v53 = vmax.f32 %v772_v50, 0.0  ;;  %v1988_v54 = vpop.f32.mrb[23].mxu0  ;;  %v2200_v50 = vld [vmem:[%s2744_s5 + $0xa0] sm:$0xff]   ;;  %v2202_v52 = vld [vmem:[%s2744_s5 + $0xb0] sm:$0xff]  }
 0x4fd   :  { %v1702_v54 = vld [vmem:[#allocation4 + $0xd] ss:$0 sm:$0xff] }
 0x4fe   :  { %v795_v55 = vpack.c.bf16 %v777_v53, %v777_v53  ;;  %v2203_v53 = vld [vmem:[%s2744_s5 + $0xb8] sm:$0xff]  }
 0x500   :  { %2006 = vmatmul.mubr.bf16.vlgmr.msra.gmra.mrb[8].mxu1 %v795_v55 }
 0x501   :  { %2041 = vmatprep.mubr.msk.bf16.mxu1 %vm2276_vm0, %v2275_v1  ;;  %2038 = vmatpush3.bf16.msra.mxu1 %v2176_v56  ;;  %v1735_v56 = vld [vmem:[#allocation4 + $0x5] ss:$0 sm:$0xff] }
 0x502   :  { %2039 = vmatprep.subr.bf16.mxu1 %v2275_v1 }
 0x505   :  { %2040 = vmatpush3.bf16.msra.mxu1 %v2178_v5 }
 0x506   :  { %2045 = vmatprep.subr.bf16.mxu1 %v2275_v1 }
 0x5d3   :  { %v883_v59 = vpop.f32.mrb[8].mxu1 }
 0x5d4   :  { %v2586_v60 = vadd.f32 %v1685_v58, %v883_v59  ;;  %v2007_v61 = vpop.f32.mrb[9].mxu1 }
 0x5d5   :  { %v886_v62 = vpop.f32.mrb[10].mxu1 }
 0x5d6   :  { %v889_v0 = vmul.f32 0.5, %v2586_v60  ;;  %v2008_v2 = vpop.f32.mrb[11].mxu1 }
 0x5d8   :  { %v890_v4 = vmul.f32 1.442695, %v889_v0 }
 0x5da   :  { %2216 = vpow2.f32 %v890_v4 }
 0x5e4   :  { %v2217_v7 = vpop.eup %2216 }
 0x5e5   :  { %v892_v8 = vmul.f32 %v2217_v7, %v2481_v63 }
 0x5e7   :  { %894 = vrot.lane.b32.xlu0 %v892_v8, %s2277_s17  ;;  %v1760_v8 = vld [vmem:[#allocation4 + $0x8] ss:$0 sm:$0xff] }
 0x5eb   :  { %1556 = vrot.lane.b32.xlu0 %v2464_v49, %s2278_s15  ;;  %v2183_v49 = vld [vmem:[%s2743_s4 + $0x88] sm:$0xff]  }
 0x659   :  { %v895_v9 = vpop.permute.xlu0 %894 }
 0x65a   :  { %v2602_v10 = vadd.f32 %v895_v9, %v2586_v60 }
 0x65c   :  { %v903_v13 = vpack.c.bf16 %v2602_v10, %v2602_v10 }
 0x65e   :  { %2014 = vmatmul.mubr.msk.bf16.vlgmr.msra.gmra.mrb[24].mxu0 %vm104_vm1, %v903_v13  ;;  %2042 = vmatmul.mubr.msk.bf16.vlgmr.msra.gmra.mrb[12].mxu1 %vm104_vm1, %v903_v13 }
 0x65f   :  { %2018 = vmatpush3.bf16.msra.mxu0 %v2180_v11  ;;  %2046 = vmatpush3.bf16.msra.mxu1 %v2181_v12 }
 0x660   :  { %2019 = vmatprep.subr.bf16.mxu0 %v2275_v1  ;;  %2047 = vmatprep.subr.bf16.mxu1 %v2275_v1 }
 0x661   :  { %2033 = vmatprep.mubr.msk.bf16.mxu0 %vm2276_vm0, %v2275_v1  ;;  %2061 = vmatprep.mubr.msk.bf16.mxu1 %vm2276_vm0, %v2275_v1 }
 0x663   :  { %2020 = vmatpush3.bf16.msra.mxu0 %v2182_v14  ;;  %2048 = vmatpush3.bf16.msra.mxu1 %v2183_v49 }
 0x664   :  { %2021 = vmatprep.subr.bf16.mxu0 %v2275_v1  ;;  %2049 = vmatprep.subr.bf16.mxu1 %v2275_v1 }
 0x667   :  { %2022 = vmatpush3.bf16.msra.mxu0 %v2184_v15  ;;  %2050 = vmatpush3.bf16.msra.mxu1 %v2185_v16  ;;  %v2204_v16 = vld [vmem:[%s2745_s6 + $0x20] sm:$0xff]  }
 0x668   :  { %2023 = vmatprep.subr.bf16.mxu0 %v2275_v1  ;;  %2051 = vmatprep.subr.bf16.mxu1 %v2275_v1 }
 0x66b   :  { %2024 = vmatpush3.bf16.msra.mxu0 %v2186_v17  ;;  %2052 = vmatpush3.bf16.msra.mxu1 %v2187_v18  ;;  %v2205_v18 = vld [vmem:[%s2745_s6 + $0x28] sm:$0xff]  }
 0x66c   :  { %2025 = vmatprep.subr.bf16.mxu0 %v2275_v1  ;;  %2053 = vmatprep.subr.bf16.mxu1 %v2275_v1 }
 0x66f   :  { %2026 = vmatpush3.bf16.msra.mxu0 %v2188_v19  ;;  %2054 = vmatpush3.bf16.msra.mxu1 %v2189_v20 }
 0x670   :  { %2027 = vmatprep.subr.bf16.mxu0 %v2275_v1  ;;  %2055 = vmatprep.subr.bf16.mxu1 %v2275_v1 }
 0x673   :  { %2028 = vmatpush3.bf16.msra.mxu0 %v2190_v21  ;;  %2056 = vmatpush3.bf16.msra.mxu1 %v2191_v22 }
 0x674   :  { %2029 = vmatprep.subr.bf16.mxu0 %v2275_v1  ;;  %2057 = vmatprep.subr.bf16.mxu1 %v2275_v1 }
 0x677   :  { %2030 = vmatpush3.bf16.msra.mxu0 %v2192_v23  ;;  %2058 = vmatpush3.bf16.msra.mxu1 %v2193_v24  ;;  %v1631_v23 = vld [vmem:[#allocation4 + $0xc] ss:$0 sm:$0xff]  ;;  %v1557_v24 = vpop.permute.xlu0 %1556 }
 0x678   :  { %2031 = vmatprep.subr.bf16.mxu0 %v2275_v1  ;;  %2059 = vmatprep.subr.bf16.mxu1 %v2275_v1 }
 0x67b   :  { %2032 = vmatpush3.bf16.msra.mxu0 %v2194_v25  ;;  %2060 = vmatpush3.bf16.msra.mxu1 %v2195_v26  ;;  %v2206_v25 = vld [vmem:[#allocation2 + $0x80] sm:$0xff]  }
 0x67c   :  { %2065 = vmatprep.subr.bf16.mxu0 %v2275_v1  ;;  %2085 = vmatprep.subr.bf16.mxu1 %v2275_v1 }
 0x731   :  { %v958_v29 = vpop.f32.mrb[24].mxu0  ;;  %v1127_v30 = vpop.f32.mrb[12].mxu1 }
 0x732   :  { %v959_v33 = vadd.f32 %v1698_v28, %v958_v29  ;;  %v1133_v34 = vadd.f32 %v1127_v30, %v2446_v32  ;;  %v2015_v35 = vpop.f32.mrb[25].mxu0  ;;  %v2043_v36 = vpop.f32.mrb[13].mxu1  ;;  %v2197_v32 = vld [vmem:[%s2744_s5 + $0x88] sm:$0xff]   ;;  %v597_v29 = vadd.f32 %v1631_v23, %v2574_v43  ;;  %v2208_v43 = vld [vmem:[#allocation2 + $0x90] sm:$0xff]  }
 0x733   :  { %v961_v37 = vpop.f32.mrb[26].mxu0  ;;  %v1130_v38 = vpop.f32.mrb[14].mxu1  ;;  %v2211_v35 = vld [vmem:[#allocation2 + $0xa8] sm:$0xff]   ;;  %v2212_v36 = vld [vmem:[#allocation2 + $0xb0] sm:$0xff]  }
 0x734   :  { %v964_v27 = vmax.f32 %v959_v33, 0.0  ;;  %v1139_v39 = vadd.f32 %v1718_v31, %v1133_v34  ;;  %v2016_v40 = vpop.f32.mrb[27].mxu0  ;;  %v2044_v41 = vpop.f32.mrb[15].mxu1  ;;  %v2207_v31 = vld [vmem:[#allocation2 + $0x88] sm:$0xff]   ;;  %v2210_v34 = vld [vmem:[#allocation2 + $0xa0] sm:$0xff]   ;;  %v2213_v37 = vld [vmem:[#allocation2 + $0xb8] sm:$0xff]  }
 0x736   :  { %v982_v44 = vpack.c.bf16 %v964_v27, %v964_v27  ;;  %v1140_v45 = vmax.f32 %v1139_v39, 0.0  ;;  %v1579_v27 = vsel %vm104_vm1, %v2485_v3, %v1557_v24  ;;  %v1773_v3 = vld [vmem:[#allocation4 + $0xb] ss:$0 sm:$0xff] }
 0x738   :  { %v1158_v46 = vpack.c.bf16 %v1140_v45, %v1140_v45  ;;  %2034 = vmatmul.mubr.bf16.vlgmr.msra.gmra.mrb[28].mxu0 %v982_v44  ;;  %v1581_v44 = vsel %vm1580_vm3, %v1579_v27, %v1557_v24 }
 0x739   :  { %2066 = vmatpush3.bf16.msra.mxu0 %v2196_v42  ;;  %2081 = vmatprep.mubr.msk.bf16.mxu0 %vm2276_vm0, %v2275_v1 }
 0x73a   :  { %2062 = vmatmul.mubr.bf16.vlgmr.msra.gmra.mrb[16].mxu1 %v1158_v46  ;;  %2067 = vmatprep.subr.bf16.mxu0 %v2275_v1 }
 0x73b   :  { %2089 = vmatprep.mubr.msk.bf16.mxu1 %vm2276_vm0, %v2275_v1  ;;  %2086 = vmatpush3.bf16.msra.mxu1 %v2204_v16 }
 0x73c   :  { %2087 = vmatprep.subr.bf16.mxu1 %v2275_v1 }
 0x73d   :  { %2068 = vmatpush3.bf16.msra.mxu0 %v2197_v32 }
 0x73e   :  { %2069 = vmatprep.subr.bf16.mxu0 %v2275_v1 }
 0x73f   :  { %2088 = vmatpush3.bf16.msra.mxu1 %v2205_v18 }
 0x740   :  { %2093 = vmatprep.subr.bf16.mxu1 %v2275_v1 }
 0x741   :  { %2070 = vmatpush3.bf16.msra.mxu0 %v2198_v47 }
 0x742   :  { %2071 = vmatprep.subr.bf16.mxu0 %v2275_v1 }
 0x745   :  { %2072 = vmatpush3.bf16.msra.mxu0 %v2199_v48 }
 0x746   :  { %2073 = vmatprep.subr.bf16.mxu0 %v2275_v1 }
 0x749   :  { %2074 = vmatpush3.bf16.msra.mxu0 %v2200_v50 }
 0x74a   :  { %2075 = vmatprep.subr.bf16.mxu0 %v2275_v1 }
 0x74d   :  { %2076 = vmatpush3.bf16.msra.mxu0 %v2201_v51 }
 0x74e   :  { %2077 = vmatprep.subr.bf16.mxu0 %v2275_v1 }
 0x751   :  { %2078 = vmatpush3.bf16.msra.mxu0 %v2202_v52 }
 0x752   :  { %2079 = vmatprep.subr.bf16.mxu0 %v2275_v1 }
 0x755   :  { %2080 = vmatpush3.bf16.msra.mxu0 %v2203_v53  ;;  %v1777_v53 = vld [vmem:[#allocation4 + $0xe] ss:$0 sm:$0xff] }
 0x80b   :  { %v1070_v55 = vpop.f32.mrb[28].mxu0 }
 0x80c   :  { %v1071_v57 = vadd.f32 %v1702_v54, %v1070_v55  ;;  %v2035_v58 = vpop.f32.mrb[29].mxu0 }
 0x80d   :  { %v1073_v59 = vpop.f32.mrb[30].mxu0  ;;  %v1246_v61 = vpop.f32.mrb[16].mxu1 }
 0x80e   :  { %v1247_v62 = vadd.f32 %v1735_v56, %v1246_v61  ;;  %v2063_v0 = vpop.f32.mrb[17].mxu1  ;;  %1568 = vrot.lane.b32.xlu0 %v1071_v57, %s2277_s17  ;;  %v2036_v2 = vpop.f32.mrb[31].mxu0 }
 0x80f   :  { %v1249_v4 = vpop.f32.mrb[18].mxu1 }
 0x810   :  { %v1252_v5 = vmax.f32 %v1247_v62, 0.0  ;;  %v2064_v6 = vpop.f32.mrb[19].mxu1 }
 0x812   :  { %v1270_v7 = vpack.c.bf16 %v1252_v5, %v1252_v5 }
 0x814   :  { %2082 = vmatmul.mubr.bf16.vlgmr.msra.gmra.mrb[32].mxu0 %v1270_v7 }
 0x880   :  { %v1569_v30 = vpop.permute.xlu0 %1568 }
 0x8e7   :  { %v1358_v9 = vpop.f32.mrb[32].mxu0 }
 0x8e8   :  { %v1359_v11 = vadd.f32 %v1760_v8, %v1358_v9  ;;  %v2083_v12 = vpop.f32.mrb[33].mxu0 }
 0x8e9   :  { %v1361_v13 = vpop.f32.mrb[34].mxu0 }
 0x8ea   :  { %v1364_v14 = vmul.f32 0.5, %v1359_v11  ;;  %1576 = vrot.lane.b32.xlu0 %v1359_v11, %s2269_s19  ;;  %v2084_v49 = vpop.f32.mrb[35].mxu0 }
 0x8ec   :  { %v1365_v15 = vmul.f32 1.442695, %v1364_v14 }
 0x8ee   :  { %2218 = vpow2.f32 %v1365_v15 }
 0x8f8   :  { %v2219_v17 = vpop.eup %2218 }
 0x8f9   :  { %1368 = vrot.lane.b32.xlu1 %v2219_v17, %s2278_s15 }
 0x95c   :  { %v1577_v39 = vpop.permute.xlu0 %1576 }
 0x96b   :  { %v1369_v19 = vpop.permute.xlu1 %1368 }
 0x96c   :  { %v1371_v20 = vmul.f32 %v1369_v19, %v2481_v63 }
 0x96e   :  { %1373 = vrot.lane.b32.xlu1 %v1371_v20, %s2269_s19 }
 0x972   :  { %1564 = vrot.lane.b32.xlu1 %v2586_v60, %s2278_s15 }
 0x9e0   :  { %v1374_v21 = vpop.permute.xlu1 %1373 }
 0x9e1   :  { %v1376_v22 = vadd.f32 %v1374_v21, %v1359_v11 }
 0x9e3   :  { %v1382_v26 = vpack.c.bf16 %v1376_v22, %v1376_v22  ;;  %1572 = vrot.lane.b32.xlu1 %v1376_v22, %s2278_s15 }
 0x9e4   :  { %v1565_v28 = vpop.permute.xlu1 %1564 }
 0x9e5   :  { %v1584_v63 = vsel %vm104_vm1, %v2602_v10, %v1565_v28  ;;  %2090 = vmatmul.mubr.msk.bf16.vlgmr.msra.gmra.mrb[20].mxu1 %vm104_vm1, %v1382_v26  ;;  %v2209_v10 = vld [vmem:[#allocation2 + $0x98] sm:$0xff]  }
 0x9e6   :  { %v1585_v60 = vsel %vm1580_vm3, %v1584_v63, %v1565_v28  ;;  %2094 = vmatpush3.bf16.msra.mxu1 %v2206_v25  ;;  %2109 = vmatprep.mubr.msk.bf16.mxu1 %vm2276_vm0, %v2275_v1 }
 0x9e7   :  { %v1586_v33 = vsel %vm1582_vm2, %v1585_v60, %v1569_v30  ;;  %1560 = vrot.lane.b32.xlu1 %v597_v29, %s2277_s17  ;;  %2095 = vmatprep.subr.bf16.mxu1 %v2275_v1 }
 0x9e8   :  { %1591 = vst [vmem:[%s2748_s9 + $0x8] sm:$0xff] %v1586_v33 }
 0x9ea   :  { %2096 = vmatpush3.bf16.msra.mxu1 %v2207_v31 }
 0x9eb   :  { %2097 = vmatprep.subr.bf16.mxu1 %v2275_v1 }
 0x9ee   :  { %2098 = vmatpush3.bf16.msra.mxu1 %v2208_v43 }
 0x9ef   :  { %2099 = vmatprep.subr.bf16.mxu1 %v2275_v1 }
 0x9f2   :  { %2100 = vmatpush3.bf16.msra.mxu1 %v2209_v10 }
 0x9f3   :  { %2101 = vmatprep.subr.bf16.mxu1 %v2275_v1 }
 0x9f6   :  { %2102 = vmatpush3.bf16.msra.mxu1 %v2210_v34 }
 0x9f7   :  { %2103 = vmatprep.subr.bf16.mxu1 %v2275_v1 }
 0x9fa   :  { %2104 = vmatpush3.bf16.msra.mxu1 %v2211_v35 }
 0x9fb   :  { %2105 = vmatprep.subr.bf16.mxu1 %v2275_v1 }
 0x9fe   :  { %2106 = vmatpush3.bf16.msra.mxu1 %v2212_v36 }
 0x9ff   :  { %2107 = vmatprep.subr.bf16.mxu1 %v2275_v1 }
 0xa02   :  { %2108 = vmatpush3.bf16.msra.mxu1 %v2213_v37 }
 0xa55   :  { %v1573_v38 = vpop.permute.xlu1 %1572 }
 0xa56   :  { %v1587_v40 = vsel %vm104_vm1, %v1569_v30, %v1573_v38 }
 0xa57   :  { %v1588_v41 = vsel %vm1580_vm3, %v1587_v40, %v1577_v39 }
 0xa58   :  { %v1589_v42 = vsel %vm1582_vm2, %v1588_v41, %v1577_v39 }
 0xa59   :  { %1592 = vst [vmem:[%s2748_s9 + $0x10] sm:$0xff] %v1589_v42  ;;  %v1561_v1 = vpop.permute.xlu1 %1560 }
 0xa5a   :  { %v1583_v45 = vsel %vm1582_vm2, %v1581_v44, %v1561_v1 }
 0xa5b   :  { %1590 = vst [vmem:[%s2748_s9] sm:$0xff] %v1583_v45 }
 0xab8   :  { %v1437_v46 = vpop.f32.mrb[20].mxu1 }
 0xab9   :  { %v1438_v32 = vadd.f32 %v1773_v3, %v1437_v46  ;;  %v2091_v47 = vpop.f32.mrb[21].mxu1 }
 0xaba   :  { %v1440_v48 = vpop.f32.mrb[22].mxu1 }
 0xabb   :  { %v1443_v50 = vmax.f32 %v1438_v32, 0.0  ;;  %v2092_v51 = vpop.f32.mrb[23].mxu1 }
 0xabd   :  { %v1461_v52 = vpack.c.bf16 %v1443_v50, %v1443_v50 }
 0xabf   :  { %2110 = vmatmul.mubr.bf16.vlgmr.msra.gmra.mrb[24].mxu1 %v1461_v52 }
 0xb92   :  { %v1549_v54 = vpop.f32.mrb[24].mxu1 }
 0xb93   :  { %v1550_v55 = vadd.f32 %v1777_v53, %v1549_v54  ;;  %v2111_v56 = vpop.f32.mrb[25].mxu1 }
 0xb94   :  { %v1552_v57 = vpop.f32.mrb[26].mxu1 }
 0xb95   :  { %1593 = vst [vmem:[%s2748_s9 + $0x18] sm:$0xff] %v1550_v55  ;;  %v2112_v58 = vpop.f32.mrb[27].mxu1 }
 0xb96   :  { %1598 = vsyncpa [#allocation3], 1 }
 0xb97   :  { %1599 = vsyncpa [#allocation5], 1 }

</bundles_post_ra>
